<compile_context>
chip_gen: v7x
topology: tpu7x:2x2x1
jax: 0.10.0
libtpu: 0.0.40
codegen_flags: <defaults>
</compile_context>

<pallas_src>
import numpy as np
import jax
import jax.numpy as jnp
from jax import lax
from jax.experimental import pallas as pl
from jax.experimental.pallas import tpu as pltpu

CIN, COUT = 40, 6
KH, KW = 5, 3
NEG_SLOPE = -0.783
OUT_H, OUT_W = 26, 42
LANE = 128


def _fused_kernel(x_ref, g_ref, s_ref, o_ref):
    # x_ref: (1, KH-1 + M, K_PAD)   bf16  batch-stacked rows with zero rows
    #                                     interleaved between images
    # g_ref: (KH, K_PAD, 128)       bf16  banded conv-transpose weight, one
    #                                     128-lane-padded chunk per kh
    # s_ref: (128, COUT*OUT_W)      bf16  one-hot nearest W-upsample selector
    # o_ref: (1, M, COUT*OUT_W)     f32   lane-dense output rows (M = B*OH)
    m = o_ref.shape[1]
    n_pad = g_ref.shape[2]

    # col2im folded into KH shifted-window matmuls, accumulated in registers.
    acc = jnp.zeros((m, n_pad), jnp.float32)
    for kh in range(KH):
        off = KH - 1 - kh                                   # static sublane offset
        xw = x_ref[0, pl.ds(off, m), :]                     # (m, K_PAD) bf16
        acc = acc + jnp.dot(xw, g_ref[kh],
                            preferred_element_type=jnp.float32)

    # where(v>0, v, v*-0.783) then tanh (VPU + EUP), before the (commuting)
    # nearest-neighbor replication so it touches fewer lanes.
    v = jnp.where(acc > 0, acc, acc * NEG_SLOPE)
    a = jnp.tanh(v).astype(jnp.bfloat16)

    # Nearest W-upsample (8 -> 42) as an exact one-hot selection matmul on the
    # otherwise idle MXU; padded selector rows (>=48) are zero so feeding the
    # full 128-lane activation is free.  Single lane-dense store.
    o_ref[0] = jnp.dot(a, s_ref[...], preferred_element_type=jnp.float32)


def precompute_params(weight, W):
    """Build the banded conv-transpose matrix G and the W-upsample selector S.

    Done once (outside the jitted forward): weight gather/transpose/cast is
    not on the per-call hot path.
    """
    assert weight.shape == (CIN, COUT, KH, KW)
    OW = W + KW - 1
    CW = COUT * OW
    K = CIN * W
    k_pad = ((K + LANE - 1) // LANE) * LANE          # 240 -> 256
    n_pad = ((CW + LANE - 1) // LANE) * LANE         # 48  -> 128

    # G[kh, ci*W+w, co*OW+ow] = weight[ci, co, kh, ow-w] if 0 <= ow-w < KW.
    ow_r = jnp.arange(OW)
    w_r = jnp.arange(W)
    kw_idx = ow_r[None, :] - w_r[:, None]                        # (W, OW)
    valid = (kw_idx >= 0) & (kw_idx < KW)
    g = weight[:, :, :, jnp.clip(kw_idx, 0, KW - 1)]             # (CIN,COUT,KH,W,OW)
    g = jnp.where(valid[None, None, None], g, 0.0)
    g = g.transpose(2, 0, 3, 1, 4).reshape(KH, K, CW)            # (KH, CIN*W, COUT*OW)
    g = jnp.pad(g, ((0, 0), (0, k_pad - K), (0, n_pad - CW)))
    g = g.astype(jnp.bfloat16)                                   # (KH, 256, 128)

    # Exact one-hot selector for nearest W-upsample (block-diagonal over cout),
    # embedded in the 128-row padded chunk.  0/1 is exact in bf16.
    w_src = (np.arange(OUT_W) * OW) // OUT_W                     # floor(dst*in/out)
    sel = (w_src[None, :] == np.arange(OW)[:, None]).astype(np.float32)   # (OW, OUT_W)
    s_full = np.kron(np.eye(COUT, dtype=np.float32), sel)        # (CW, COUT*OUT_W)
    s_pad = np.zeros((n_pad, COUT * OUT_W), np.float32)
    s_pad[:CW] = s_full
    s = jnp.asarray(s_pad, dtype=jnp.bfloat16)                   # (128, 252)
    return g, s


def model_forward(x, g, s):
    """x: (N, CIN, H, W) f32 NCHW.  g, s: from precompute_params."""
    N, cin, H, W = x.shape
    assert cin == CIN
    OH, OW = H + KH - 1, W + KW - 1              # stride-1 / pad-0 ConvTranspose2d
    K = CIN * W
    k_pad = g.shape[1]
    n_pad = s.shape[0]
    assert g.shape == (KH, k_pad, n_pad)

    # The H-direction nearest map must be "drop trailing rows" (true here:
    # OH=27 -> OUT_H=26).  Any other H needs a different kernel path.
    assert OH >= OUT_H and all((d * OH) // OUT_H == d for d in range(OUT_H)), \
        "in-kernel H interpolation shortcut requires identity nearest map"

    # Batch folding: aim for 2 well-filled grid steps (v7x has 2 TCs; on
    # v5e/v6e the extra step is ~0.35us).  Cap per-step rows for huge batches.
    steps = 1 if N == 1 else 2
    B = -(-N // steps)
    MAX_B = 64
    if B > MAX_B:
        B = MAX_B
        steps = -(-N // B)
    n_padded = steps * B
    M = B * OH                                   # output rows per grid step
    R = (KH - 1) + M                             # stacked LHS rows per grid step

    # Glue: NCHW -> rows=(n,h), lanes=(cin,w) padded to 256; append KH-1 zero
    # rows per image (so kh-shifted windows never mix adjacent images) and
    # prepend KH-1 zero rows per step.
    xr = x.astype(jnp.bfloat16).transpose(0, 2, 1, 3).reshape(N, H, K)
    xr = jnp.pad(xr, ((0, n_padded - N), (0, OH - H), (0, k_pad - K)))   # (n_padded, OH, 256)
    xr = xr.reshape(steps, M, k_pad)
    xr = jnp.pad(xr, ((0, 0), (KH - 1, 0), (0, 0)))                      # (steps, R, 256)

    out = pl.pallas_call(
        _fused_kernel,
        out_shape=jax.ShapeDtypeStruct((steps, M, COUT * OUT_W), jnp.float32),
        grid=(steps,),
        in_specs=[
            pl.BlockSpec((1, R, k_pad), lambda i: (i, 0, 0)),
            pl.BlockSpec((KH, k_pad, n_pad), lambda i: (0, 0, 0)),    # resident weight
            pl.BlockSpec((n_pad, COUT * OUT_W), lambda i: (0, 0)),    # resident selector
        ],
        out_specs=pl.BlockSpec((1, M, COUT * OUT_W), lambda i: (i, 0, 0)),
        compiler_params=pltpu.CompilerParams(
            dimension_semantics=("parallel",)),                       # v7x: one step per TC
    )(xr, g, s)

    # Cheap wrapper-side layout: (steps, B*OH, 252) -> (N, COUT, 26, 42),
    # dropping batch padding and the last H row (27 -> 26 nearest map).
    out = out.reshape(n_padded, OH, COUT, OUT_W)[:N, :OUT_H]
    return out.transpose(0, 2, 1, 3)


def _reference(x, weight):
    # Pure-JAX reference: ConvTranspose2d == full correlation with flipped kernel.
    w_corr = jnp.flip(weight, (2, 3)).transpose(1, 0, 2, 3)    # (COUT, CIN, KH, KW)
    y = lax.conv_general_dilated(
        x, w_corr, window_strides=(1, 1),
        padding=[(KH - 1, KH - 1), (KW - 1, KW - 1)],
        dimension_numbers=("NCHW", "OIHW", "NCHW"))
    y = jnp.where(y > 0, y, y * NEG_SLOPE)
    y = jnp.tanh(y)
    OH, OW = y.shape[2], y.shape[3]
    h_idx = (jnp.arange(OUT_H) * OH) // OUT_H
    w_idx = (jnp.arange(OUT_W) * OW) // OUT_W
    return y[:, :, h_idx, :][:, :, :, w_idx]


if __name__ == "__main__":
    key = jax.random.PRNGKey(0)
    kx, kw = jax.random.split(key)
    # Small batch; spatial dims (23, 6) as implied by the module's input.
    N, H, W = 4, 23, 6
    x = jax.random.normal(kx, (N, CIN, H, W), dtype=jnp.float32)
    fan = CIN * KH * KW
    weight = jax.random.uniform(
        kw, (CIN, COUT, KH, KW), dtype=jnp.float32, minval=-1.0, maxval=1.0
    ) / (fan ** 0.5)

    g, s = precompute_params(weight, W)          # hoisted weight prep (once)
    fwd = jax.jit(model_forward)
    out = jax.block_until_ready(fwd(x, g, s))
    assert out.shape == (N, COUT, OUT_H, OUT_W), out.shape
    assert bool(jnp.all(jnp.isfinite(out)))

    ref = _reference(x, weight)
    max_err = float(jnp.max(jnp.abs(out - ref)))
    assert max_err < 5e-2, f"mismatch vs reference: {max_err}"  # bf16 matmul tolerance

    print("KERNEL_OK")
</pallas_src>

<mosaic_0001>
module attributes {stable_mosaic.version = 11 : i64} {
  func.func @_fused_kernel(%arg0: i32, %arg1: memref<1x58x256xbf16, #tpu.memory_space<vmem>>, %arg2: memref<5x256x128xbf16, #tpu.memory_space<vmem>>, %arg3: memref<128x252xbf16, #tpu.memory_space<vmem>>, %arg4: memref<1x54x252xf32, #tpu.memory_space<vmem>>) attributes {dimension_semantics = [#tpu.dimension_semantics<parallel>], iteration_bounds = array<i64: 2>, scalar_prefetch = 0 : i64, scratch_operands = 0 : i64, tpu.core_type = #tpu.core_type<tc>, window_params = [{transform_indices = @transform_0, window_bounds = array<i64: 1, 58, 256>}, {pipeline_mode = #tpu.pipeline_mode<synchronous>, transform_indices = @transform_1, window_bounds = array<i64: 5, 256, 128>}, {pipeline_mode = #tpu.pipeline_mode<synchronous>, transform_indices = @transform_2, window_bounds = array<i64: 128, 252>}, {transform_indices = @transform_3, window_bounds = array<i64: 1, 54, 252>}]} {
    %cst = arith.constant 0.000000e+00 : f32
    %0 = vector.broadcast %cst : f32 to vector<54x128xf32>
    %c0 = arith.constant 0 : index
    %c4 = arith.constant 4 : index
    %c0_0 = arith.constant 0 : index
    %1 = vector.load %arg1[%c0, %c4, %c0_0] : memref<1x58x256xbf16, #tpu.memory_space<vmem>>, vector<1x54x256xbf16>
    %2 = vector.shape_cast %1 : vector<1x54x256xbf16> to vector<54x256xbf16>
    %c0_1 = arith.constant 0 : index
    %c0_2 = arith.constant 0 : index
    %c0_3 = arith.constant 0 : index
    %3 = vector.load %arg2[%c0_1, %c0_2, %c0_3] : memref<5x256x128xbf16, #tpu.memory_space<vmem>>, vector<1x256x128xbf16>
    %4 = vector.shape_cast %3 : vector<1x256x128xbf16> to vector<256x128xbf16>
    %cst_4 = arith.constant dense<0.000000e+00> : vector<54x128xf32>
    %5 = tpu.matmul %2, %4, %cst_4 {dimension_numbers = #tpu.dot_dimension_numbers<[1], [0], [0], [1], [0, 0, 1, 1], [], []>} : vector<54x256xbf16>, vector<256x128xbf16>, vector<54x128xf32> -> vector<54x128xf32>
    %6 = arith.addf %0, %5 : vector<54x128xf32>
    %c0_5 = arith.constant 0 : index
    %c3 = arith.constant 3 : index
    %c0_6 = arith.constant 0 : index
    %7 = vector.load %arg1[%c0_5, %c3, %c0_6] : memref<1x58x256xbf16, #tpu.memory_space<vmem>>, vector<1x54x256xbf16>
    %8 = vector.shape_cast %7 : vector<1x54x256xbf16> to vector<54x256xbf16>
    %c1 = arith.constant 1 : index
    %c0_7 = arith.constant 0 : index
    %c0_8 = arith.constant 0 : index
    %9 = vector.load %arg2[%c1, %c0_7, %c0_8] : memref<5x256x128xbf16, #tpu.memory_space<vmem>>, vector<1x256x128xbf16>
    %10 = vector.shape_cast %9 : vector<1x256x128xbf16> to vector<256x128xbf16>
    %cst_9 = arith.constant dense<0.000000e+00> : vector<54x128xf32>
    %11 = tpu.matmul %8, %10, %cst_9 {dimension_numbers = #tpu.dot_dimension_numbers<[1], [0], [0], [1], [0, 0, 1, 1], [], []>} : vector<54x256xbf16>, vector<256x128xbf16>, vector<54x128xf32> -> vector<54x128xf32>
    %12 = arith.addf %6, %11 : vector<54x128xf32>
    %c0_10 = arith.constant 0 : index
    %c2 = arith.constant 2 : index
    %c0_11 = arith.constant 0 : index
    %13 = vector.load %arg1[%c0_10, %c2, %c0_11] : memref<1x58x256xbf16, #tpu.memory_space<vmem>>, vector<1x54x256xbf16>
    %14 = vector.shape_cast %13 : vector<1x54x256xbf16> to vector<54x256xbf16>
    %c2_12 = arith.constant 2 : index
    %c0_13 = arith.constant 0 : index
    %c0_14 = arith.constant 0 : index
    %15 = vector.load %arg2[%c2_12, %c0_13, %c0_14] : memref<5x256x128xbf16, #tpu.memory_space<vmem>>, vector<1x256x128xbf16>
    %16 = vector.shape_cast %15 : vector<1x256x128xbf16> to vector<256x128xbf16>
    %cst_15 = arith.constant dense<0.000000e+00> : vector<54x128xf32>
    %17 = tpu.matmul %14, %16, %cst_15 {dimension_numbers = #tpu.dot_dimension_numbers<[1], [0], [0], [1], [0, 0, 1, 1], [], []>} : vector<54x256xbf16>, vector<256x128xbf16>, vector<54x128xf32> -> vector<54x128xf32>
    %18 = arith.addf %12, %17 : vector<54x128xf32>
    %c0_16 = arith.constant 0 : index
    %c1_17 = arith.constant 1 : index
    %c0_18 = arith.constant 0 : index
    %19 = vector.load %arg1[%c0_16, %c1_17, %c0_18] : memref<1x58x256xbf16, #tpu.memory_space<vmem>>, vector<1x54x256xbf16>
    %20 = vector.shape_cast %19 : vector<1x54x256xbf16> to vector<54x256xbf16>
    %c3_19 = arith.constant 3 : index
    %c0_20 = arith.constant 0 : index
    %c0_21 = arith.constant 0 : index
    %21 = vector.load %arg2[%c3_19, %c0_20, %c0_21] : memref<5x256x128xbf16, #tpu.memory_space<vmem>>, vector<1x256x128xbf16>
    %22 = vector.shape_cast %21 : vector<1x256x128xbf16> to vector<256x128xbf16>
    %cst_22 = arith.constant dense<0.000000e+00> : vector<54x128xf32>
    %23 = tpu.matmul %20, %22, %cst_22 {dimension_numbers = #tpu.dot_dimension_numbers<[1], [0], [0], [1], [0, 0, 1, 1], [], []>} : vector<54x256xbf16>, vector<256x128xbf16>, vector<54x128xf32> -> vector<54x128xf32>
    %24 = arith.addf %18, %23 : vector<54x128xf32>
    %c0_23 = arith.constant 0 : index
    %c0_24 = arith.constant 0 : index
    %c0_25 = arith.constant 0 : index
    %25 = vector.load %arg1[%c0_23, %c0_24, %c0_25] : memref<1x58x256xbf16, #tpu.memory_space<vmem>>, vector<1x54x256xbf16>
    %26 = vector.shape_cast %25 : vector<1x54x256xbf16> to vector<54x256xbf16>
    %c4_26 = arith.constant 4 : index
    %c0_27 = arith.constant 0 : index
    %c0_28 = arith.constant 0 : index
    %27 = vector.load %arg2[%c4_26, %c0_27, %c0_28] : memref<5x256x128xbf16, #tpu.memory_space<vmem>>, vector<1x256x128xbf16>
    %28 = vector.shape_cast %27 : vector<1x256x128xbf16> to vector<256x128xbf16>
    %cst_29 = arith.constant dense<0.000000e+00> : vector<54x128xf32>
    %29 = tpu.matmul %26, %28, %cst_29 {dimension_numbers = #tpu.dot_dimension_numbers<[1], [0], [0], [1], [0, 0, 1, 1], [], []>} : vector<54x256xbf16>, vector<256x128xbf16>, vector<54x128xf32> -> vector<54x128xf32>
    %30 = arith.addf %24, %29 : vector<54x128xf32>
    %cst_30 = arith.constant 0.000000e+00 : f32
    %31 = vector.broadcast %cst_30 : f32 to vector<54x128xf32>
    %32 = arith.cmpf ogt, %30, %31 : vector<54x128xf32>
    %cst_31 = arith.constant -0.782999992 : f32
    %33 = vector.broadcast %cst_31 : f32 to vector<54x128xf32>
    %34 = arith.mulf %30, %33 : vector<54x128xf32>
    %35 = arith.select %32, %30, %34 : vector<54x128xi1>, vector<54x128xf32>
    %36 = math.tanh %35 : vector<54x128xf32>
    %37 = arith.truncf %36 : vector<54x128xf32> to vector<54x128xbf16>
    %c0_32 = arith.constant 0 : index
    %c0_33 = arith.constant 0 : index
    %38 = vector.load %arg3[%c0_32, %c0_33] : memref<128x252xbf16, #tpu.memory_space<vmem>>, vector<128x252xbf16>
    %cst_34 = arith.constant dense<0.000000e+00> : vector<54x252xf32>
    %39 = tpu.matmul %37, %38, %cst_34 {dimension_numbers = #tpu.dot_dimension_numbers<[1], [0], [0], [1], [0, 0, 1, 1], [], []>} : vector<54x128xbf16>, vector<128x252xbf16>, vector<54x252xf32> -> vector<54x252xf32>
    %c0_35 = arith.constant 0 : index
    %c0_36 = arith.constant 0 : index
    %c0_37 = arith.constant 0 : index
    %40 = vector.load %arg4[%c0_35, %c0_36, %c0_37] : memref<1x54x252xf32, #tpu.memory_space<vmem>>, vector<1x54x252xf32>
    %41 = vector.shape_cast %40 : vector<1x54x252xf32> to vector<54x252xf32>
    %42 = vector.shape_cast %39 : vector<54x252xf32> to vector<1x54x252xf32>
    tpu.vector_store %arg4[%c0_35, %c0_36, %c0_37], %42 {strides = array<i32>} : memref<1x54x252xf32, #tpu.memory_space<vmem>>, vector<1x54x252xf32>,
    return
  }
  func.func @transform_0(%arg0: i32) -> (i32, i32, i32) {
    %c0_i32 = arith.constant 0 : i32
    %c0_i32_0 = arith.constant 0 : i32
    %c0_i32_1 = arith.constant 0 : i32
    return %arg0, %c0_i32, %c0_i32_0 : i32, i32, i32
  }
  func.func @transform_1(%arg0: i32) -> (i32, i32, i32) {
    %c0_i32 = arith.constant 0 : i32
    %c0_i32_0 = arith.constant 0 : i32
    %c0_i32_1 = arith.constant 0 : i32
    %c0_i32_2 = arith.constant 0 : i32
    return %c0_i32, %c0_i32_0, %c0_i32_1 : i32, i32, i32
  }
  func.func @transform_2(%arg0: i32) -> (i32, i32) {
    %c0_i32 = arith.constant 0 : i32
    %c0_i32_0 = arith.constant 0 : i32
    %c0_i32_1 = arith.constant 0 : i32
    return %c0_i32, %c0_i32_0 : i32, i32
  }
  func.func @transform_3(%arg0: i32) -> (i32, i32, i32) {
    %c0_i32 = arith.constant 0 : i32
    %c0_i32_0 = arith.constant 0 : i32
    %c0_i32_1 = arith.constant 0 : i32
    return %arg0, %c0_i32, %c0_i32_0 : i32, i32, i32
  }
}

</mosaic_0001>

<bundles_post_ra>
// kernel: model_forward.1
= control target key start
LH: loop header
LB: loop body
LE: loop exit
PB: predicated region body
PF: predicated region fallthrough
CT: control target
= control target key end

     0   :  { %s2359_s12 = smov 0   ;;  %s2808_s0 = inlined_call_operand.vmem [shape: bf16[2,58,256], index: 0, kind: input, shape index: {}]   ;;  %s2809_s1 = inlined_call_operand.vmem [shape: bf16[5,256,128], index: 1, kind: input, shape index: {}]   ;;  %s2810_s2 = inlined_call_operand.vmem [shape: bf16[128,252], index: 2, kind: input, shape index: {}]   ;;  %s2811_s3 = inlined_call_operand.vmem [shape: f32[2,54,252], index: 3, kind: output, shape index: {}]  }
   0x1 LB: > { %s1725_s13 = sadd.s32 4294967295, %s2336_s12   ;;  %p1729_p0 = scmp.ge.s32.totalorder %s2336_s12, 1  ;;  %s2336_s12 = sphi %s2359_s12, %s13_s12  }
   0x2   : > { %p137_p1 = scmp.lt.s32.totalorder %s2336_s12, 3 }
   0x4   : > { %p138_p2 = pnand %p1729_p0, %p137_p1 }
   0x5   : > { %v2192_v0 = vld [vmem:[%s2809_s1 + $0xc0] sm:$0xff] (!%p138_p2)   ;;  %v2196_v4 = vld [vmem:[%s2809_s1 + $0xc8] sm:$0xff] (!%p138_p2)   ;;  %v2200_v8 = vld [vmem:[%s2809_s1 + $0xd0] sm:$0xff] (!%p138_p2)   ;;  %p161_p3 = scmp.lt.s32.totalorder (!%p138_p2), %s1725_s13, 1  ;;  %vm278_vm0 = vsmask.f32 (!%p138_p2), 6400 }
   0x6   : > { %141 = sbr.rel (%p138_p2) target bundleno = 577 (0x241), region = 32  ;;  %v2193_v1 = vld [vmem:[%s2809_s1 + $0x40] sm:$0xff] (!%p138_p2)   ;;  %1982 = vmatprep.subr.bf16.mxu0 (!%p138_p2), %v2192_v0  ;;  %v2197_v5 = vld [vmem:[%s2809_s1 + $0x48] sm:$0xff] (!%p138_p2)   ;;  %v2201_v9 = vld [vmem:[%s2809_s1 + $0x50] sm:$0xff] (!%p138_p2)   ;;  %vm522_vm1 = vcmask (!%p138_p2), 1045504   ;;  %vm774_vm2 = vcmask (!%p138_p2), 1046528  }
   0x7   : > { %v2194_v2 = vld [vmem:[%s2809_s1 + $0x80] sm:$0xff] (!%p138_p2)   ;;  %2022 = vmatprep.subr.bf16.mxu1 (!%p138_p2), %v2193_v1  ;;  %v2198_v6 = vld [vmem:[%s2809_s1 + $0x88] sm:$0xff] (!%p138_p2)   ;;  %v2202_v10 = vld [vmem:[%s2809_s1 + $0x90] sm:$0xff] (!%p138_p2)   ;;  %vm1003_vm3 = vsmask.f32 (!%p138_p2), 7424  ;;  %vm1655_vm11 = vcmask (!%p138_p2), 1014784  }
   0x8   : > { %v2195_v3 = vld [vmem:[%s2809_s1] sm:$0xff] (!%p138_p2)   ;;  %1983 = vmatpush3.bf16.msra.mxu0 (!%p138_p2), %v2194_v2  ;;  %v2199_v7 = vld [vmem:[%s2809_s1 + $0x8] sm:$0xff] (!%p138_p2)   ;;  %v2203_v11 = vld [vmem:[%s2809_s1 + $0x10] sm:$0xff] (!%p138_p2)   ;;  %vm1668_vm12 = vcmask (!%p138_p2), 1012736  }
   0x9   : > { %2023 = vmatpush3.bf16.msra.mxu1 (!%p138_p2), %v2195_v3  ;;  %1984 = vmatprep.subr.bf16.mxu0 (!%p138_p2), %v2196_v4  ;;  %v2204_v12 = vld [vmem:[%s2809_s1 + $0xd8] sm:$0xff] (!%p138_p2)   ;;  %v2208_v16 = vld [vmem:[%s2809_s1 + $0xe0] sm:$0xff] (!%p138_p2)   ;;  %v2212_v20 = vld [vmem:[%s2809_s1 + $0xe8] sm:$0xff] (!%p138_p2)  }
   0xa   : > { %2024 = vmatprep.subr.bf16.mxu1 (!%p138_p2), %v2197_v5  ;;  %v2205_v13 = vld [vmem:[%s2809_s1 + $0x58] sm:$0xff] (!%p138_p2)   ;;  %v2209_v17 = vld [vmem:[%s2809_s1 + $0x60] sm:$0xff] (!%p138_p2)   ;;  %v2213_v21 = vld [vmem:[%s2809_s1 + $0x68] sm:$0xff] (!%p138_p2)  }
   0xb   : > { %v2206_v14 = vld [vmem:[%s2809_s1 + $0x98] sm:$0xff] (!%p138_p2)   ;;  %v2210_v18 = vld [vmem:[%s2809_s1 + $0xa0] sm:$0xff] (!%p138_p2)   ;;  %v2214_v22 = vld [vmem:[%s2809_s1 + $0xa8] sm:$0xff] (!%p138_p2)  }
   0xc   : > { %1985 = vmatpush3.bf16.msra.mxu0 (!%p138_p2), %v2198_v6  ;;  %v2207_v15 = vld [vmem:[%s2809_s1 + $0x18] sm:$0xff] (!%p138_p2)   ;;  %v2211_v19 = vld [vmem:[%s2809_s1 + $0x20] sm:$0xff] (!%p138_p2)   ;;  %v2215_v23 = vld [vmem:[%s2809_s1 + $0x28] sm:$0xff] (!%p138_p2)  }
   0xd   : > { %2025 = vmatpush3.bf16.msra.mxu1 %v2199_v7  ;;  %1986 = vmatprep.subr.bf16.mxu0 %v2200_v8  ;;  %s2813_s13 = smov (!%p161_p3, %s1725_s13), 1  ;;  %v2216_v24 = vld [vmem:[%s2809_s1 + $0xf0] sm:$0xff]   ;;  %v2220_v28 = vld [vmem:[%s2809_s1 + $0xf8] sm:$0xff]   ;;  %v2231_v44 = vld [vmem:[%s2809_s1 + $0x140] sm:$0xff]  }
   0xe   : > { %2026 = vmatprep.subr.bf16.mxu1 %v2201_v9  ;;  %v2217_v25 = vld [vmem:[%s2809_s1 + $0x70] sm:$0xff]   ;;  %s1981_s18 = sshll.u32 %s2813_s13, 6  ;;  %v2221_v29 = vld [vmem:[%s2809_s1 + $0x78] sm:$0xff]   ;;  %v2233_v53 = vld [vmem:[%s2809_s1 + $0x1c0] sm:$0xff]   ;;  %s2182_s11 = smul.u32 112, %s2813_s13 }
   0xf   : > { %v2218_v26 = vld [vmem:[%s2809_s1 + $0xb0] sm:$0xff]   ;;  %s2467_s27 = scalar_lea.vmem %s2808_s0, %s1981_s18  ;;  %v2222_v30 = vld [vmem:[%s2809_s1 + $0xb8] sm:$0xff]   ;;  %v2234_v62 = vld [vmem:[%s2809_s1 + $0x180] sm:$0xff]  }
  0x10   : > { %1987 = vmatpush3.bf16.msra.mxu0 %v2202_v10  ;;  %v2219_v27 = vld [vmem:[%s2809_s1 + $0x30] sm:$0xff]   ;;  %v2223_v31 = vld [vmem:[%s2809_s1 + $0x38] sm:$0xff]   ;;  %v2476_v32 = vld [vmem:[%s2467_s27 + $0x8] sm:$0xff]  ;;  %s170_s16 = scalar_lea.vmem %s2811_s3, %s2182_s11 }
  0x11   : > { %2027 = vmatpush3.bf16.msra.mxu1 %v2203_v11  ;;  %1988 = vmatprep.subr.bf16.mxu0 %v2204_v12  ;;  %v212_v33 = vld [vmem:[%s2467_s27] sm:$0xee]  ;;  %v2480_v34 = vld [vmem:[%s2467_s27 + $0x14] ss:$8 sps:$4 sm:$0xff]   ;;  %v2487_v39 = vld [vmem:[%s2467_s27 + $0x10] ss:$8 sps:$4 sm:$0xff]  }
  0x12   : > { %2028 = vmatprep.subr.bf16.mxu1 %v2205_v13  ;;  %v172_v35 = vld [vmem:[%s2467_s27] sm:$0xcc]  ;;  %v1766_v36 = vcombine.high %v212_v33, %v2476_v32  ;;  %v1765_v38 = vcombine.low %v212_v33, %v2476_v32  ;;  %v305_v40 = vshrl.u32 %v2480_v34, 16  ;;  %v308_v41 = vshll.u32 %v2480_v34, 16  ;;  %v2235_v7 = vld [vmem:[%s2809_s1 + $0x148] sm:$0xff]   ;;  %v2245_v33 = vld [vmem:[%s2809_s1 + $0x190] sm:$0xff]  }
  0x13   : > { %v1790_v37 = vcombine.high %v172_v35, %v2476_v32  ;;  %v527_v42 = vrot.slane %v2480_v34, 2  ;;  %v1789_v43 = vcombine.low %v172_v35, %v2476_v32  ;;  %v288_v52 = vshrl.u32 %v2487_v39, 16  ;;  %v2232_v4 = vld [vmem:[%s2809_s1 + $0x100] sm:$0xff]   ;;  %v2237_v9 = vld [vmem:[%s2809_s1 + $0x1c8] sm:$0xff]  }
  0x14   : > { %1989 = vmatpush3.bf16.msra.mxu0 %v2206_v14  ;;  %v297_v45 = vshrl.u32 %v1766_v36, 16  ;;  %v300_v46 = vshll.u32 %v1766_v36, 16  ;;  %v280_v48 = vshrl.u32 %v1765_v38, 16  ;;  %v307_v49 = vrot.slane %v305_v40, 1  ;;  %v2526_v10 = vld [vmem:[%s2467_s27 + $0x24] ss:$8 sps:$4 sm:$0xff]  }
  0x15   : > { %2029 = vmatpush3.bf16.msra.mxu1 %v2207_v15  ;;  %1990 = vmatprep.subr.bf16.mxu0 %v2208_v16  ;;  %v526_v47 = vrot.slane %v1790_v37, 2  ;;  %v310_v50 = vrot.slane %v308_v41, 2  ;;  %v283_v51 = vshll.u32 %v1765_v38, 16  ;;  %v290_v60 = vrot.slane %v288_v52, 1  ;;  %v2240_v12 = vld [vmem:[%s2809_s1 + $0x188] sm:$0xff]   ;;  %v2246_v36 = vld [vmem:[%s2809_s1 + $0x158] sm:$0xff]  }
  0x16   : > { %2030 = vmatprep.subr.bf16.mxu1 %v2209_v17  ;;  %v299_v54 = vrot.slane %v297_v45, 1  ;;  %v302_v55 = vrot.slane %v300_v46, 2  ;;  %v282_v57 = vrot.slane %v280_v48, 1  ;;  %v291_v61 = vshll.u32 %v2487_v39, 16  ;;  %v2533_v13 = vld [vmem:[%s2467_s27 + $0x20] ss:$8 sps:$4 sm:$0xff]  }
  0x17   : > { %v528_v56 = vsel %vm522_vm1, %v526_v47, %v527_v42  ;;  %v311_v58 = vor.u32 %v310_v50, %v307_v49  ;;  %v285_v59 = vrot.slane %v283_v51, 2  ;;  %v523_v0 = vrot.slane %v1789_v43, 2  ;;  %v2236_v14 = vld [vmem:[%s2809_s1 + $0x108] sm:$0xff]   ;;  %v2247_v38 = vld [vmem:[%s2809_s1 + $0x118] sm:$0xff]   ;;  %v2578_v43 = vld [vmem:[%s2467_s27 + $0x30] sm:$0xff] }
  0x18   : > { %1991 = vmatpush3.bf16.msra.mxu0 %v2210_v18  ;;  %673 = vmatprep.mubr.bf16.mxu1 %v528_v56  ;;  %v303_v63 = vor.u32 %v302_v55, %v299_v54  ;;  %v524_v1 = vrot.slane %v2487_v39, 2  ;;  %v293_v3 = vrot.slane %v291_v61, 2  ;;  %v323_v15 = vshrl.u32 %v2526_v10, 16  ;;  %v2250_v46 = vld [vmem:[%s2809_s1 + $0x198] sm:$0xff]   ;;  %v2252_v48 = vld [vmem:[%s2809_s1 + $0x160] sm:$0xff]  }
  0x19   : > { %2031 = vmatpush3.bf16.msra.mxu1 %v2211_v19  ;;  %1992 = vmatprep.subr.bf16.mxu0 %v2212_v20  ;;  %v286_v2 = vor.u32 %v285_v59, %v282_v57  ;;  %v326_v16 = vshll.u32 %v2526_v10, 16  ;;  %v531_v17 = vrot.slane %v2526_v10, 2  ;;  %v314_v18 = vshrl.u32 %v2533_v13, 16  ;;  %v2253_v56 = vld [vmem:[%s2809_s1 + $0x120] sm:$0xff]  }
  0x1a   : > { %2032 = vmatprep.subr.bf16.mxu1 %v2213_v21  ;;  %v312_v5 = vsel %vm278_vm0, %v303_v63, %v311_v58  ;;  %v525_v6 = vsel %vm522_vm1, %v523_v0, %v524_v1  ;;  %v294_v8 = vor.u32 %v293_v3, %v290_v60  ;;  %v317_v19 = vshll.u32 %v2533_v13, 16  ;;  %v2242_v21 = vld [vmem:[%s2809_s1 + $0x150] sm:$0xff]   ;;  %v2254_v57 = vld [vmem:[%s2809_s1 + $0x1e0] sm:$0xff]  }
  0x1b   : > { %485 = vmatprep.mubr.bf16.mxu0 %v312_v5  ;;  %v529_v20 = vrot.slane %v2533_v13, 2  ;;  %v2255_v63 = vld [vmem:[%s2809_s1 + $0x1a0] sm:$0xff]   ;;  %v2257_v5 = vld [vmem:[%s2809_s1 + $0x128] sm:$0xff]  }
  0x1c   : > { %1993 = vmatpush3.bf16.msra.mxu0 %v2214_v22  ;;  %v295_v11 = vsel %vm278_vm0, %v286_v2, %v294_v8  ;;  %v325_v22 = vrot.slane %v323_v15, 1  ;;  %v2256_v2 = vld [vmem:[%s2809_s1 + $0x168] sm:$0xff]  }
  0x1d   : > { %2033 = vmatpush3.bf16.msra.mxu1 %v2215_v23  ;;  %1994 = vmatprep.subr.bf16.mxu0 %v2216_v24  ;;  %v328_v23 = vrot.slane %v326_v16, 2  ;;  %v532_v24 = vsel %vm522_vm1, %v527_v42, %v531_v17  ;;  %v2248_v42 = vld [vmem:[%s2809_s1 + $0x1d8] sm:$0xff]  }
  0x1e   : > { %2034 = vmatprep.subr.bf16.mxu1 %v2217_v25  ;;  %v316_v25 = vrot.slane %v314_v18, 1 }
  0x20   : > { %1995 = vmatpush3.bf16.msra.mxu0 %v2218_v26  ;;  %v319_v26 = vrot.slane %v317_v19, 2 }
  0x21   : > { %2035 = vmatpush3.bf16.msra.mxu1 %v2219_v27  ;;  %1996 = vmatprep.subr.bf16.mxu0 %v2220_v28  ;;  %v530_v27 = vsel %vm522_vm1, %v524_v1, %v529_v20  ;;  %v2243_v28 = vld [vmem:[%s2809_s1 + $0x110] sm:$0xff]  }
  0x22   : > { %2036 = vmatprep.subr.bf16.mxu1 %v2221_v29  ;;  %v329_v29 = vor.u32 %v328_v23, %v325_v22  ;;  %v2265_v22 = vld [vmem:[%s2809_s1 + $0x138] sm:$0xff]   ;;  %v776_v23 = vrot.slane %v2487_v39, 1 }
  0x24   : > { %1997 = vmatpush3.bf16.msra.mxu0 %v2222_v30  ;;  %v2244_v30 = vld [vmem:[%s2809_s1 + $0x1d0] sm:$0xff]   ;;  %v330_v35 = vsel %vm278_vm0, %v311_v58, %v329_v29 }
  0x25   : > { %2037 = vmatpush3.bf16.msra.mxu1 %v2223_v31  ;;  %2062 = vmatprep.subr.bf16.mxu0 %v2231_v44  ;;  %v320_v31 = vor.u32 %v319_v26, %v316_v25  ;;  %v179_v44 = vld [vmem:[%s2467_s27 + $0x38] sm:$0x11]  ;;  %v1026_v25 = vrot.slane %v308_v41, 1  ;;  %v705_v26 = vld [vmem:[%s2467_s27] sm:$0xee] }
  0x26   : > { %2102 = vmatprep.subr.bf16.mxu1 %v2233_v53  ;;  %v1772_v45 = vcombine.high %v2578_v43, %v179_v44  ;;  %v1771_v47 = vcombine.low %v2578_v43, %v179_v44 }
  0x27   : > { %486 = vmatmul.mubr.bf16.vlgmr.msra.gmra.mrb[0].mxu0 %v295_v11  ;;  %v321_v37 = vsel %vm278_vm0, %v294_v8, %v320_v31  ;;  %v2260_v11 = vld [vmem:[%s2809_s1 + $0x170] sm:$0xff]  }
  0x28   : > { %674 = vmatmul.mubr.bf16.vlgmr.msra.gmra.mrb[0].mxu1 %v525_v6  ;;  %2063 = vmatpush3.bf16.msra.mxu0 %v2232_v4  ;;  %v341_v49 = vshrl.u32 %v1772_v45, 16  ;;  %v344_v50 = vshll.u32 %v1772_v45, 16  ;;  %v535_v51 = vrot.slane %v1772_v45, 2  ;;  %v332_v53 = vshrl.u32 %v1771_v47, 16  ;;  %v2273_v45 = vld [vmem:[%s2809_s1 + $0x200] sm:$0xff]  }
  0x29   : > { %2103 = vmatpush3.bf16.msra.mxu1 %v2234_v62  ;;  %2064 = vmatprep.subr.bf16.mxu0 %v2235_v7  ;;  %v335_v54 = vshll.u32 %v1771_v47, 16  ;;  %v533_v55 = vrot.slane %v1771_v47, 2  ;;  %v2258_v7 = vld [vmem:[%s2809_s1 + $0x1e8] sm:$0xff]  }
  0x2a   : > { %2104 = vmatprep.subr.bf16.mxu1 %v2237_v9  ;;  %681 = vmatprep.mubr.bf16.mxu1 %v532_v24  ;;  %v343_v58 = vrot.slane %v341_v49, 1  ;;  %v346_v59 = vrot.slane %v344_v50, 2  ;;  %v536_v60 = vsel %vm522_vm1, %v531_v17, %v535_v51  ;;  %v334_v62 = vrot.slane %v332_v53, 1  ;;  %v2259_v9 = vld [vmem:[%s2809_s1 + $0x1a8] sm:$0xff]   ;;  %v2263_v17 = vld [vmem:[%s2809_s1 + $0x1b0] sm:$0xff]   ;;  %v2266_v24 = vld [vmem:[%s2809_s1 + $0x1f8] sm:$0xff]  }
  0x2b   : > { %493 = vmatprep.mubr.bf16.mxu0 %v330_v35  ;;  %v337_v0 = vrot.slane %v335_v54, 2  ;;  %v534_v1 = vsel %vm522_vm1, %v529_v20, %v533_v55  ;;  %v2264_v20 = vld [vmem:[%s2809_s1 + $0x178] sm:$0xff]   ;;  %v1846_v49 = vcombine.high %v2578_v43, %v2578_v43 }
  0x2c   : > { %2065 = vmatpush3.bf16.msra.mxu0 %v2236_v14  ;;  %v347_v3 = vor.u32 %v346_v59, %v343_v58  ;;  %v2262_v14 = vld [vmem:[%s2809_s1 + $0x1f0] sm:$0xff]   ;;  %v2275_v59 = vld [vmem:[%s2809_s1 + $0x208] sm:$0xff]  }
  0x2d   : > { %2105 = vmatpush3.bf16.msra.mxu1 %v2240_v12  ;;  %2066 = vmatprep.subr.bf16.mxu0 %v2242_v21  ;;  %v338_v4 = vor.u32 %v337_v0, %v334_v62  ;;  %v2261_v12 = vld [vmem:[%s2809_s1 + $0x130] sm:$0xff]   ;;  %v779_v21 = vrot.slane %v2480_v34, 1 }
  0x2e   : > { %2106 = vmatprep.subr.bf16.mxu1 %v2244_v30  ;;  %v348_v6 = vsel %vm278_vm0, %v329_v29, %v347_v3  ;;  %v2269_v29 = vld [vmem:[%s2809_s1 + $0x1b8] sm:$0xff]   ;;  %v783_v30 = vrot.slane %v2526_v10, 1 }
  0x2f   : > { %494 = vmatmul.mubr.bf16.gmra.mrb[4].mxu0 %v321_v37  ;;  %v339_v8 = vsel %vm278_vm0, %v320_v31, %v338_v4  ;;  %v2270_v31 = vld [vmem:[%s2809_s1 + $0x240] sm:$0xff]  }
  0x30   : > { %682 = vmatmul.mubr.bf16.gmra.mrb[4].mxu1 %v530_v27  ;;  %2067 = vmatpush3.bf16.msra.mxu0 %v2243_v28  ;;  %v1839_v27 = vcombine.low %v705_v26, %v2476_v32  ;;  %v1840_v28 = vcombine.high %v705_v26, %v2476_v32  ;;  %v784_v53 = vsel %vm774_vm2, %v779_v21, %v783_v30 }
  0x31   : > { %2107 = vmatpush3.bf16.msra.mxu1 %v2245_v33  ;;  %2068 = vmatprep.subr.bf16.mxu0 %v2246_v36  ;;  %v964_v33 = vld [vmem:[%s2467_s27] sm:$0xff] }
  0x32   : > { %2108 = vmatprep.subr.bf16.mxu1 %v2248_v42  ;;  %689 = vmatprep.mubr.bf16.mxu1 %v536_v60  ;;  %v775_v41 = vrot.slane %v1839_v27, 1  ;;  %v778_v35 = vrot.slane %v1840_v28, 1  ;;  %v2651_v36 = vcombine.low %v964_v33, %v2476_v32  ;;  %v2654_v37 = vcombine.high %v964_v33, %v2476_v32  ;;  %v2287_v28 = vld [vmem:[%s2809_s1 + $0x230] sm:$0xff]  }
  0x33   : > { %501 = vmatprep.mubr.bf16.mxu0 %v348_v6  ;;  %v787_v60 = vrot.slane %v1846_v49, 1  ;;  %v2278_v6 = vld [vmem:[%s2809_s1 + $0x258] sm:$0xff]   ;;  %v1241_v33 = vld [vmem:[%s2467_s27 + $0x30] sm:$0x77] }
  0x34   : > { %2069 = vmatpush3.bf16.msra.mxu0 %v2247_v38  ;;  %v780_v38 = vsel %vm774_vm2, %v778_v35, %v779_v21  ;;  %v1017_v42 = vshrl.u32 %v2654_v37, 16  ;;  %v1019_v44 = vshll.u32 %v2654_v37, 16  ;;  %v777_v47 = vsel %vm774_vm2, %v775_v41, %v776_v23 }
  0x35   : > { %2109 = vmatpush3.bf16.msra.mxu1 %v2250_v46  ;;  %2070 = vmatprep.subr.bf16.mxu0 %v2252_v48  ;;  %v1042_v46 = vrot.slane %v326_v16, 1  ;;  %v1005_v32 = vshrl.u32 %v2651_v36, 16  ;;  %v1007_v48 = vshll.u32 %v2651_v36, 16  ;;  %v1038_v16 = vor.u32 %v1026_v25, %v305_v40  ;;  %v2276_v40 = vld [vmem:[%s2809_s1 + $0x250] sm:$0xff]  }
  0x36   : > { %2110 = vmatprep.subr.bf16.mxu1 %v2254_v57  ;;  %v1021_v50 = vrot.slane %v1019_v44, 1  ;;  %v781_v57 = vrot.slane %v2533_v13, 1  ;;  %v1946_v41 = vcombine.high %v1241_v33, %v1241_v33  ;;  %v1945_v35 = vcombine.low %v1241_v33, %v1241_v33  ;;  %v2306_v44 = vld [vmem:[%s2810_s2 + $0x44] ss:$8 sps:$4 sm:$0xff]  }
  0x37   : > { %502 = vmatmul.mubr.bf16.gmra.mrb[8].mxu0 %v339_v8  ;;  %v1009_v54 = vrot.slane %v1007_v48, 1  ;;  %v1054_v8 = vor.u32 %v1042_v46, %v323_v15  ;;  %v2283_v15 = vld [vmem:[%s2809_s1 + $0x220] sm:$0xff]  }
  0x38   : > { %690 = vmatmul.mubr.bf16.gmra.mrb[8].mxu1 %v534_v1  ;;  %2071 = vmatpush3.bf16.msra.mxu0 %v2253_v56  ;;  %v1022_v56 = vor.u32 %v1021_v50, %v1017_v42  ;;  %v782_v1 = vsel %vm774_vm2, %v776_v23, %v781_v57  ;;  %v2284_v23 = vld [vmem:[%s2809_s1 + $0x268] sm:$0xff]   ;;  %v2301_v42 = vld [vmem:[%s2810_s2 + $0x30] ss:$8 sps:$4 sm:$0xff]  }
  0x39   : > { %2111 = vmatpush3.bf16.msra.mxu1 %v2255_v63  ;;  %697 = vmatprep.mubr.bf16.mxu1 %v535_v51  ;;  %v2274_v51 = vld [vmem:[%s2809_s1 + $0x248] sm:$0xff]   ;;  %v1010_v58 = vor.u32 %v1009_v54, %v1005_v32  ;;  %v1056_v63 = vshll.u32 %v1846_v49, 16  ;;  %v2313_v50 = vld [vmem:[%s2810_s2 + $0x70] ss:$8 sps:$4 sm:$0xff]  }
  0x3a   : > { %2072 = vmatprep.subr.bf16.mxu0 %v2256_v2  ;;  %2112 = vmatprep.subr.bf16.mxu1 %v2258_v7  ;;  %v1027_v62 = vsel %vm1003_vm3, %v1022_v56, %v1026_v25  ;;  %v2277_v2 = vld [vmem:[%s2809_s1 + $0x210] sm:$0xff]   ;;  %v788_v7 = vsel %vm774_vm2, %v783_v30, %v787_v60  ;;  %v2285_v25 = vld [vmem:[%s2809_s1 + $0x228] sm:$0xff]  }
  0x3b   : > { %509 = vmatprep.mubr.bf16.mxu0 %v347_v3  ;;  %v2312_v32 = vld [vmem:[%s2810_s2 + $0x64] ss:$8 sps:$4 sm:$0xff]   ;;  %v2310_v48 = vld [vmem:[%s2810_s2 + $0x60] ss:$8 sps:$4 sm:$0xff]  }
  0x3c   : > { %2073 = vmatpush3.bf16.msra.mxu0 %v2257_v5  ;;  %v1845_v5 = vcombine.low %v2578_v43, %v2578_v43 }
  0x3d   : > { %2113 = vmatpush3.bf16.msra.mxu1 %v2259_v9  ;;  %2074 = vmatprep.subr.bf16.mxu0 %v2260_v11  ;;  %v1058_v9 = vrot.slane %v1056_v63, 1  ;;  %v2282_v11 = vld [vmem:[%s2809_s1 + $0x260] sm:$0xff]  }
  0x3e   : > { %2114 = vmatprep.subr.bf16.mxu1 %v2262_v14  ;;  %v785_v43 = vrot.slane %v1845_v5, 1  ;;  %v1060_v27 = vshrl.u32 %v1845_v5, 16 }
  0x3f   : > { %510 = vmatmul.mubr.bf16.gmra.mrb[12].mxu0 %v338_v4  ;;  %v1034_v4 = vrot.slane %v317_v19, 1  ;;  %v1059_v14 = vsel %vm1003_vm3, %v1054_v8, %v1058_v9 }
  0x40   : > { %698 = vmatmul.mubr.bf16.gmra.mrb[12].mxu1 %v533_v55  ;;  %2075 = vmatpush3.bf16.msra.mxu0 %v2261_v12  ;;  %v1014_v55 = vrot.slane %v291_v61, 1  ;;  %v1043_v61 = vsel %vm1003_vm3, %v1038_v16, %v1042_v46  ;;  %v1048_v12 = vshll.u32 %v1845_v5, 16  ;;  %v2309_v46 = vld [vmem:[%s2810_s2 + $0x54] ss:$8 sps:$4 sm:$0xff]  }
  0x41   : > { %2115 = vmatpush3.bf16.msra.mxu1 %v2263_v17  ;;  %2076 = vmatprep.subr.bf16.mxu0 %v2264_v20  ;;  %v786_v17 = vsel %vm774_vm2, %v781_v57, %v785_v43  ;;  %v1046_v20 = vor.u32 %v1034_v4, %v314_v18  ;;  %v2286_v18 = vld [vmem:[%s2809_s1 + $0x270] sm:$0xff]  }
  0x42   : > { %2116 = vmatprep.subr.bf16.mxu1 %v2266_v24  ;;  %925 = vmatprep.mubr.bf16.mxu0 %v780_v38  ;;  %v1015_v0 = vsel %vm1003_vm3, %v1010_v58, %v1014_v55  ;;  %v1030_v3 = vor.u32 %v1014_v55, %v288_v52  ;;  %v2279_v52 = vld [vmem:[%s2809_s1 + $0x218] sm:$0xff]   ;;  %v1050_v21 = vrot.slane %v1048_v12, 1 }
  0x43   : > { %1202 = vmatprep.mubr.bf16.mxu1 %v1027_v62  ;;  %v2303_v38 = vld [vmem:[%s2810_s2 + $0x34] ss:$8 sps:$4 sm:$0xff]  }
  0x44   : > { %2077 = vmatpush3.bf16.msra.mxu0 %v2265_v22  ;;  %v1035_v19 = vsel %vm1003_vm3, %v1030_v3, %v1034_v4  ;;  %v1063_v22 = vshrl.u32 %v1846_v49, 16  ;;  %v1051_v24 = vsel %vm1003_vm3, %v1046_v20, %v1050_v21  ;;  %v1062_v30 = vor.u32 %v1060_v27, %v1050_v21  ;;  %v2315_v49 = vld [vmem:[%s2810_s2 + $0x74] ss:$8 sps:$4 sm:$0xff]  }
  0x45   : > { %2117 = vmatpush3.bf16.msra.mxu1 %v2269_v29  ;;  %2142 = vmatprep.subr.bf16.mxu0 %v2270_v31  ;;  %v2288_v29 = vld [vmem:[%s2809_s1 + $0x278] sm:$0xff]  }
  0x46   : > { %v1065_v26 = vor.u32 %v1063_v22, %v1058_v9  ;;  %v2289_v31 = vld [vmem:[%s2809_s1 + $0x238] sm:$0xff]  }
  0x47   : > { %926 = vmatmul.mubr.bf16.vlgmr.msra.gmra.mrb[16].mxu0 %v777_v47  ;;  %v2307_v47 = vld [vmem:[%s2810_s2 + $0x50] ss:$8 sps:$4 sm:$0xff]  }
  0x48   : > { %2143 = vmatpush3.bf16.msra.mxu0 %v2273_v45  ;;  %933 = vmatprep.mubr.bf16.mxu0 %v784_v53  ;;  %v2304_v45 = vld [vmem:[%s2810_s2 + $0x40] ss:$8 sps:$4 sm:$0xff]  }
  0x49   : > { %2144 = vmatprep.subr.bf16.mxu0 %v2274_v51  ;;  %1203 = vmatmul.mubr.bf16.vlgmr.msra.gmra.mrb[16].mxu1 %v1015_v0  ;;  %v2338_v51 = vmov 0  }
  0x4a   : > { %1210 = vmatprep.mubr.bf16.mxu1 %v1043_v61 }
  0x4c   : > { %2145 = vmatpush3.bf16.msra.mxu0 %v2275_v59 }
  0x4d   : > { %2146 = vmatprep.subr.bf16.mxu0 %v2276_v40 }
  0x4f   : > { %934 = vmatmul.mubr.bf16.gmra.mrb[20].mxu0 %v782_v1 }
  0x50   : > { %2147 = vmatpush3.bf16.msra.mxu0 %v2277_v2  ;;  %941 = vmatprep.mubr.bf16.mxu0 %v788_v7 }
  0x51   : > { %2148 = vmatprep.subr.bf16.mxu0 %v2278_v6  ;;  %1211 = vmatmul.mubr.bf16.gmra.mrb[20].mxu1 %v1035_v19 }
  0x52   : > { %1218 = vmatprep.mubr.bf16.mxu1 %v1059_v14 }
  0x54   : > { %2149 = vmatpush3.bf16.msra.mxu0 %v2279_v52 }
  0x55   : > { %2150 = vmatprep.subr.bf16.mxu0 %v2282_v11 }
  0x57   : > { %942 = vmatmul.mubr.bf16.gmra.mrb[24].mxu0 %v786_v17 }
  0x58   : > { %2151 = vmatpush3.bf16.msra.mxu0 %v2283_v15  ;;  %949 = vmatprep.mubr.bf16.mxu0 %v787_v60 }
  0x59   : > { %2152 = vmatprep.subr.bf16.mxu0 %v2284_v23  ;;  %1219 = vmatmul.mubr.bf16.gmra.mrb[24].mxu1 %v1051_v24 }
  0x5a   : > { %1226 = vmatprep.mubr.bf16.mxu1 %v1065_v26 }
  0x5c   : > { %2153 = vmatpush3.bf16.msra.mxu0 %v2285_v25 }
  0x5d   : > { %2154 = vmatprep.subr.bf16.mxu0 %v2286_v18 }
  0x5f   : > { %950 = vmatmul.mubr.bf16.gmra.mrb[28].mxu0 %v785_v43 }
  0x60   : > { %2155 = vmatpush3.bf16.msra.mxu0 %v2287_v28  ;;  %1416 = vmatprep.mubr.bf16.mxu0 %v2654_v37  ;;  %v2294_v37 = vld [vmem:[%s2810_s2 + $0x4] ss:$8 sps:$4 sm:$0xff]  }
  0x61   : > { %2156 = vmatprep.subr.bf16.mxu0 %v2288_v29  ;;  %1227 = vmatmul.mubr.bf16.gmra.mrb[28].mxu1 %v1062_v30 }
  0x62   : > { %1583 = vmatprep.subr.bf16.mxu1 %v2294_v37  ;;  %1615 = vmatprep.mubr.bf16.mxu1 %v2338_v51 }
  0x64   : > { %2157 = vmatpush3.bf16.msra.mxu0 %v2289_v31 }
  0x67   : > { %1417 = vmatmul.mubr.bf16.vlgmr.msra.gmra.mrb[32].mxu0 %v2651_v36  ;;  %v2292_v36 = vld [vmem:[%s2810_s2] ss:$8 sps:$4 sm:$0xff]  }
  0x68   : > { %1424 = vmatprep.mubr.bf16.mxu0 %v2480_v34  ;;  %1584 = vmatpush1.bf16.msra.mxu1 %v2292_v36  ;;  %v2297_v34 = vld [vmem:[%s2810_s2 + $0x14] ss:$8 sps:$4 sm:$0xff]  }
  0x69   : > { %1585 = vmatprep.subr.bf16.mxu1 %v2297_v34 }
  0x6f   : > { %1425 = vmatmul.mubr.bf16.gmra.mrb[36].mxu0 %v2487_v39  ;;  %v2295_v39 = vld [vmem:[%s2810_s2 + $0x10] ss:$8 sps:$4 sm:$0xff]  }
  0x70   : > { %1432 = vmatprep.mubr.bf16.mxu0 %v2526_v10  ;;  %1586 = vmatpush1.bf16.msra.mxu1 %v2295_v39  ;;  %v2298_v10 = vld [vmem:[%s2810_s2 + $0x20] ss:$8 sps:$4 sm:$0xff]  }
  0x77   : > { %1433 = vmatmul.mubr.bf16.gmra.mrb[40].mxu0 %v2533_v13  ;;  %v2300_v13 = vld [vmem:[%s2810_s2 + $0x24] ss:$8 sps:$4 sm:$0xff]  }
  0x78   : > { %1440 = vmatprep.mubr.bf16.mxu0 %v1946_v41  ;;  %1587 = vmatprep.subr.bf16.mxu1 %v2300_v13 }
  0x79   : > { %1588 = vmatpush1.bf16.msra.mxu1 %v2298_v10 }
  0x7a   : > { %1589 = vmatprep.subr.bf16.mxu1 %v2303_v38 }
  0x7d   : > { %1590 = vmatpush1.bf16.msra.mxu1 %v2301_v42 }
  0x7e   : > { %1591 = vmatprep.subr.bf16.mxu1 %v2306_v44 }
  0x7f   : > { %1441 = vmatmul.mubr.bf16.gmra.mrb[44].mxu0 %v1945_v35 }
  0x81   : > { %1592 = vmatpush1.bf16.msra.mxu1 %v2304_v45 }
  0x82   : > { %1593 = vmatprep.subr.bf16.mxu1 %v2309_v46 }
  0x85   : > { %1594 = vmatpush1.bf16.msra.mxu1 %v2307_v47 }
  0x86   : > { %1595 = vmatprep.subr.bf16.mxu1 %v2312_v32 }
  0x89   : > { %1596 = vmatpush1.bf16.msra.mxu1 %v2310_v48 }
  0x8a   : > { %1597 = vmatprep.subr.bf16.mxu1 %v2315_v49 }
  0x8d   : > { %1598 = vmatpush1.bf16.msra.mxu1 %v2313_v50 }
  0xfa   : > { %v1998_v56 = vpop.f32.mrb[0].mxu0 }
  0xfb   : > { %v2038_v53 = vpop.f32.mrb[0].mxu1  ;;  %v1999_v58 = vpop.f32.mrb[1].mxu0 }
  0xfc   : > { %v2039_v16 = vpop.f32.mrb[1].mxu1  ;;  %v2000_v60 = vadd.f32 %v1999_v58, %v1998_v56  ;;  %v2001_v62 = vpop.f32.mrb[2].mxu0 }
  0xfd   : > { %v2040_v54 = vadd.f32 %v2039_v16, %v2038_v53  ;;  %v2041_v55 = vpop.f32.mrb[2].mxu1  ;;  %v2002_v40 = vpop.f32.mrb[3].mxu0 }
  0xfe   : > { %v2042_v57 = vpop.f32.mrb[3].mxu1  ;;  %v2003_v63 = vadd.f32 %v2002_v40, %v2001_v62 }
  0xff   : > { %v2043_v59 = vadd.f32 %v2042_v57, %v2041_v55  ;;  %v676_v61 = vadd.f32 %v2040_v54, %v2000_v60 }
 0x101   : > { %v679_v1 = vadd.f32 %v2043_v59, %v2003_v63 }
 0x102   : > { %v2004_v5 = vpop.f32.mrb[4].mxu0 }
 0x103   : > { %v2044_v0 = vpop.f32.mrb[4].mxu1  ;;  %v2005_v7 = vpop.f32.mrb[5].mxu0 }
 0x104   : > { %v2045_v2 = vpop.f32.mrb[5].mxu1  ;;  %v2006_v9 = vadd.f32 %v2005_v7, %v2004_v5  ;;  %v2007_v52 = vpop.f32.mrb[6].mxu0 }
 0x105   : > { %v2046_v3 = vadd.f32 %v2045_v2, %v2044_v0  ;;  %v2047_v4 = vpop.f32.mrb[6].mxu1  ;;  %v2008_v19 = vpop.f32.mrb[7].mxu0 }
 0x106   : > { %v2048_v6 = vpop.f32.mrb[7].mxu1  ;;  %v2009_v11 = vadd.f32 %v2008_v19, %v2007_v52 }
 0x107   : > { %v2049_v8 = vadd.f32 %v2048_v6, %v2047_v4  ;;  %v684_v43 = vadd.f32 %v2046_v3, %v2006_v9 }
 0x109   : > { %v687_v12 = vadd.f32 %v2049_v8, %v2009_v11 }
 0x10a   : > { %v2010_v22 = vpop.f32.mrb[8].mxu0 }
 0x10b   : > { %v2050_v14 = vpop.f32.mrb[8].mxu1  ;;  %v2011_v24 = vpop.f32.mrb[9].mxu0 }
 0x10c   : > { %v2051_v15 = vpop.f32.mrb[9].mxu1  ;;  %v2012_v25 = vadd.f32 %v2011_v24, %v2010_v22  ;;  %v2013_v26 = vpop.f32.mrb[10].mxu0 }
 0x10d   : > { %v2052_v17 = vadd.f32 %v2051_v15, %v2050_v14  ;;  %v2053_v20 = vpop.f32.mrb[10].mxu1  ;;  %v2014_v18 = vpop.f32.mrb[11].mxu0 }
 0x10e   : > { %v2054_v21 = vpop.f32.mrb[11].mxu1  ;;  %v2015_v28 = vadd.f32 %v2014_v18, %v2013_v26 }
 0x10f   : > { %v2055_v23 = vadd.f32 %v2054_v21, %v2053_v20  ;;  %v692_v27 = vadd.f32 %v2052_v17, %v2012_v25 }
 0x111   : > { %v695_v31 = vadd.f32 %v2055_v23, %v2015_v28 }
 0x112   : > { %v2016_v37 = vpop.f32.mrb[12].mxu0 }
 0x113   : > { %v2056_v29 = vpop.f32.mrb[12].mxu1  ;;  %v2017_v36 = vpop.f32.mrb[13].mxu0 }
 0x114   : > { %v2057_v30 = vpop.f32.mrb[13].mxu1  ;;  %v2018_v34 = vadd.f32 %v2017_v36, %v2016_v37  ;;  %v2019_v39 = vpop.f32.mrb[14].mxu0 }
 0x115   : > { %v2058_v33 = vadd.f32 %v2057_v30, %v2056_v29  ;;  %v2059_v41 = vpop.f32.mrb[14].mxu1  ;;  %v2020_v10 = vpop.f32.mrb[15].mxu0 }
 0x116   : > { %v2060_v35 = vpop.f32.mrb[15].mxu1 }
 0x117   : > { %v700_v13 = vadd.f32 %v2058_v33, %v2018_v34 }
 0x11a   : > { %v2078_v38 = vpop.f32.mrb[16].mxu0 }
 0x11b   : > { %v2079_v42 = vpop.f32.mrb[17].mxu0 }
 0x11c   : > { %v2080_v44 = vadd.f32 %v2079_v42, %v2078_v38  ;;  %v2081_v45 = vpop.f32.mrb[18].mxu0  ;;  %v2118_v32 = vpop.f32.mrb[16].mxu1 }
 0x11d   : > { %v2082_v46 = vpop.f32.mrb[19].mxu0  ;;  %v2119_v49 = vpop.f32.mrb[17].mxu1 }
 0x11e   : > { %v957_v47 = vadd.f32 %v2080_v44, %v676_v61  ;;  %v2083_v48 = vadd.f32 %v2082_v46, %v2081_v45  ;;  %v2120_v53 = vadd.f32 %v2119_v49, %v2118_v32  ;;  %v2121_v16 = vpop.f32.mrb[18].mxu1 }
 0x11f   : > { %v2122_v54 = vpop.f32.mrb[19].mxu1 }
 0x120   : > { %v958_v50 = vadd.f32 %v2083_v48, %v679_v1  ;;  %v1234_v55 = vadd.f32 %v2120_v53, %v957_v47  ;;  %v2123_v56 = vadd.f32 %v2122_v54, %v2121_v16 }
 0x122   : > { %v2084_v57 = vpop.f32.mrb[20].mxu0  ;;  %v1235_v59 = vadd.f32 %v2123_v56, %v958_v50 }
 0x123   : > { %v2085_v58 = vpop.f32.mrb[21].mxu0 }
 0x124   : > { %v2086_v60 = vadd.f32 %v2085_v58, %v2084_v57  ;;  %v2087_v62 = vpop.f32.mrb[22].mxu0  ;;  %v2124_v0 = vpop.f32.mrb[20].mxu1 }
 0x125   : > { %v2088_v40 = vpop.f32.mrb[23].mxu0  ;;  %v2125_v3 = vpop.f32.mrb[21].mxu1 }
 0x126   : > { %v959_v63 = vadd.f32 %v2086_v60, %v684_v43  ;;  %v2089_v2 = vadd.f32 %v2088_v40, %v2087_v62  ;;  %v2126_v4 = vadd.f32 %v2125_v3, %v2124_v0  ;;  %v2127_v5 = vpop.f32.mrb[22].mxu1 }
 0x127   : > { %v2128_v6 = vpop.f32.mrb[23].mxu1 }
 0x128   : > { %v960_v61 = vadd.f32 %v2089_v2, %v687_v12  ;;  %v1236_v1 = vadd.f32 %v2126_v4, %v959_v63  ;;  %v2129_v7 = vadd.f32 %v2128_v6, %v2127_v5 }
 0x12a   : > { %v2090_v8 = vpop.f32.mrb[24].mxu0  ;;  %v1237_v52 = vadd.f32 %v2129_v7, %v960_v61 }
 0x12b   : > { %v2091_v9 = vpop.f32.mrb[25].mxu0 }
 0x12c   : > { %v2092_v19 = vadd.f32 %v2091_v9, %v2090_v8  ;;  %v2093_v11 = vpop.f32.mrb[26].mxu0  ;;  %v2130_v17 = vpop.f32.mrb[24].mxu1 }
 0x12d   : > { %v2094_v14 = vpop.f32.mrb[27].mxu0  ;;  %v2131_v21 = vpop.f32.mrb[25].mxu1 }
 0x12e   : > { %v961_v15 = vadd.f32 %v2092_v19, %v692_v27  ;;  %v2095_v20 = vadd.f32 %v2094_v14, %v2093_v11  ;;  %v2132_v22 = vadd.f32 %v2131_v21, %v2130_v17  ;;  %v2133_v23 = vpop.f32.mrb[26].mxu1 }
 0x12f   : > { %v2134_v24 = vpop.f32.mrb[27].mxu1 }
 0x130   : > { %v962_v43 = vadd.f32 %v2095_v20, %v695_v31  ;;  %v1238_v12 = vadd.f32 %v2132_v22, %v961_v15  ;;  %v2135_v25 = vadd.f32 %v2134_v24, %v2133_v23 }
 0x132   : > { %v2096_v26 = vpop.f32.mrb[28].mxu0  ;;  %v1239_v28 = vadd.f32 %v2135_v25, %v962_v43 }
 0x133   : > { %v2097_v18 = vpop.f32.mrb[29].mxu0 }
 0x134   : > { %v2098_v29 = vadd.f32 %v2097_v18, %v2096_v26  ;;  %v2099_v30 = vpop.f32.mrb[30].mxu0  ;;  %v2136_v35 = vpop.f32.mrb[28].mxu1 }
 0x135   : > { %v2100_v33 = vpop.f32.mrb[31].mxu0  ;;  %v2137_v37 = vpop.f32.mrb[29].mxu1 }
 0x136   : > { %v963_v41 = vadd.f32 %v2098_v29, %v700_v13  ;;  %v2138_v36 = vadd.f32 %v2137_v37, %v2136_v35  ;;  %v2139_v27 = vpop.f32.mrb[30].mxu1 }
 0x137   : > { %v2140_v34 = vpop.f32.mrb[31].mxu1 }
 0x138   : > { %v1240_v39 = vadd.f32 %v2138_v36, %v963_v41 }
 0x13a   : > { %v2158_v10 = vpop.f32.mrb[32].mxu0 }
 0x13b   : > { %v2159_v31 = vpop.f32.mrb[33].mxu0 }
 0x13c   : > { %v2160_v38 = vadd.f32 %v2159_v31, %v2158_v10  ;;  %v2161_v42 = vpop.f32.mrb[34].mxu0 }
 0x13d   : > { %v2162_v44 = vpop.f32.mrb[35].mxu0 }
 0x13e   : > { %v1448_v45 = vadd.f32 %v2160_v38, %v1234_v55  ;;  %v2163_v46 = vadd.f32 %v2162_v44, %v2161_v42 }
 0x140   : > { %vm1455_vm4 = vcmp.gt.f32.partialorder %v1448_v45, 0.0  ;;  %v1462_v47 = vmul.f32 -0.783, %v1448_v45  ;;  %v1449_v32 = vadd.f32 %v2163_v46, %v1235_v59 }
 0x142   : > { %v1469_v48 = vsel %vm1455_vm4, %v1448_v45, %v1462_v47  ;;  %vm1456_vm5 = vcmp.gt.f32.partialorder %v1449_v32, 0.0  ;;  %v1463_v49 = vmul.f32 -0.783, %v1449_v32  ;;  %v2164_v13 = vpop.f32.mrb[36].mxu0 }
 0x143   : > { %v2165_v50 = vpop.f32.mrb[37].mxu0  ;;  %2316 = vtanh.f32 %v1469_v48 }
 0x144   : > { %v1470_v53 = vsel %vm1456_vm5, %v1449_v32, %v1463_v49  ;;  %v2166_v16 = vadd.f32 %v2165_v50, %v2164_v13  ;;  %v2167_v54 = vpop.f32.mrb[38].mxu0 }
 0x145   : > { %2318 = vtanh.f32 %v1470_v53  ;;  %v2168_v56 = vpop.f32.mrb[39].mxu0 }
 0x146   : > { %v1450_v57 = vadd.f32 %v2166_v16, %v1236_v1  ;;  %v2169_v58 = vadd.f32 %v2168_v56, %v2167_v54 }
 0x148   : > { %vm1457_vm6 = vcmp.gt.f32.partialorder %v1450_v57, 0.0  ;;  %v1464_v60 = vmul.f32 -0.783, %v1450_v57  ;;  %v1451_v55 = vadd.f32 %v2169_v58, %v1237_v52 }
 0x14a   : > { %v1471_v62 = vsel %vm1457_vm6, %v1450_v57, %v1464_v60  ;;  %vm1458_vm7 = vcmp.gt.f32.partialorder %v1451_v55, 0.0  ;;  %v1465_v40 = vmul.f32 -0.783, %v1451_v55  ;;  %v2170_v59 = vpop.f32.mrb[40].mxu0 }
 0x14b   : > { %v2171_v63 = vpop.f32.mrb[41].mxu0  ;;  %2320 = vtanh.f32 %v1471_v62 }
 0x14c   : > { %v1472_v0 = vsel %vm1458_vm7, %v1451_v55, %v1465_v40  ;;  %v2172_v2 = vadd.f32 %v2171_v63, %v2170_v59  ;;  %v2173_v3 = vpop.f32.mrb[42].mxu0 }
 0x14d   : > { %2322 = vtanh.f32 %v1472_v0  ;;  %v2174_v61 = vpop.f32.mrb[43].mxu0  ;;  %v2317_v4 = vpop.eup %2316 }
 0x14e   : > { %v1452_v5 = vadd.f32 %v2172_v2, %v1238_v12  ;;  %v2175_v6 = vadd.f32 %v2174_v61, %v2173_v3 }
 0x14f   : > { %v2319_v7 = vpop.eup %2318 }
 0x150   : > { %vm1459_vm8 = vcmp.gt.f32.partialorder %v1452_v5, 0.0  ;;  %v1466_v1 = vmul.f32 -0.783, %v1452_v5  ;;  %v1453_v8 = vadd.f32 %v2175_v6, %v1239_v28  ;;  %v1483_v9 = vpack.c.bf16 %v2319_v7, %v2317_v4 }
 0x152   : > { %v1473_v52 = vsel %vm1459_vm8, %v1452_v5, %v1466_v1  ;;  %vm1460_vm9 = vcmp.gt.f32.partialorder %v1453_v8, 0.0  ;;  %v1467_v19 = vmul.f32 -0.783, %v1453_v8  ;;  %v2176_v11 = vpop.f32.mrb[44].mxu0  ;;  %1616 = vmatmul.mubr.bf16.vlgmr.msra.gmra.mrb[32].mxu1 %v1483_v9 }
 0x153   : > { %v2177_v14 = vpop.f32.mrb[45].mxu0  ;;  %1625 = vmatprep.mubr.bf16.mxu1 %v2338_v51  ;;  %2324 = vtanh.f32 %v1473_v52 }
 0x154   : > { %v1474_v15 = vsel %vm1460_vm9, %v1453_v8, %v1467_v19  ;;  %v2178_v17 = vadd.f32 %v2177_v14, %v2176_v11  ;;  %v2179_v20 = vpop.f32.mrb[46].mxu0 }
 0x155   : > { %2326 = vtanh.f32 %v1474_v15  ;;  %v2180_v21 = vpop.f32.mrb[47].mxu0  ;;  %v2321_v43 = vpop.eup %2320 }
 0x156   : > { %v1454_v22 = vadd.f32 %v2178_v17, %v1240_v39 }
 0x157   : > { %v2323_v23 = vpop.eup %2322 }
 0x158   : > { %vm1461_vm10 = vcmp.gt.f32.partialorder %v1454_v22, 0.0  ;;  %v1468_v24 = vmul.f32 -0.783, %v1454_v22  ;;  %v1484_v12 = vpack.c.bf16 %v2323_v23, %v2321_v43 }
 0x15a   : > { %1626 = vmatmul.mubr.bf16.gmra.mrb[36].mxu1 %v1484_v12  ;;  %v1475_v25 = vsel %vm1461_vm10, %v1454_v22, %v1468_v24 }
 0x15b   : > { %1635 = vmatprep.mubr.bf16.mxu1 %v2338_v51  ;;  %2328 = vtanh.f32 %v1475_v25 }
 0x15d   : > { %v2325_v26 = vpop.eup %2324 }
 0x15f   : > { %v2327_v18 = vpop.eup %2326 }
 0x160   : > { %v1485_v28 = vpack.c.bf16 %v2327_v18, %v2325_v26 }
 0x162   : > { %1636 = vmatmul.mubr.bf16.gmra.mrb[40].mxu1 %v1485_v28 }
 0x163   : > { %1645 = vmatprep.mubr.bf16.mxu1 %v2338_v51 }
 0x165   : > { %v2329_v29 = vpop.eup %2328 }
 0x166   : > { %v1486_v30 = vpack.c.bf16 %v2329_v29, %v2329_v29 }
 0x16a   : > { %1646 = vmatmul.mubr.bf16.gmra.mrb[44].mxu1 %v1486_v30 }
 0x225   : > { %v1617_v33 = vpop.f32.mrb[32].mxu1 }
 0x226   : > { %1654 = vst [vmem:[%s170_s16] sm:$0xff] %v1617_v33  ;;  %v1619_v41 = vpop.f32.mrb[33].mxu1 }
 0x227   : > { %1656 = vst.msk [vmem:[%s170_s16 + $0x8] sm:$0xff] %vm1655_vm11, %v1619_v41  ;;  %v1621_v35 = vpop.f32.mrb[34].mxu1 }
 0x228   : > { %1657 = vst [vmem:[%s170_s16 + $0x10] sm:$0xff] %v1621_v35  ;;  %v1623_v37 = vpop.f32.mrb[35].mxu1 }
 0x229   : > { %1658 = vst.msk [vmem:[%s170_s16 + $0x18] sm:$0xff] %vm1655_vm11, %v1623_v37 }
 0x22d   : > { %v1627_v51 = vpop.f32.mrb[36].mxu1 }
 0x22e   : > { %1659 = vst [vmem:[%s170_s16 + $0x20] sm:$0xff] %v1627_v51  ;;  %v1629_v36 = vpop.f32.mrb[37].mxu1 }
 0x22f   : > { %1660 = vst.msk [vmem:[%s170_s16 + $0x28] sm:$0xff] %vm1655_vm11, %v1629_v36  ;;  %v1631_v27 = vpop.f32.mrb[38].mxu1 }
 0x230   : > { %1661 = vst [vmem:[%s170_s16 + $0x30] sm:$0xff] %v1631_v27  ;;  %v1633_v34 = vpop.f32.mrb[39].mxu1 }
 0x231   : > { %1662 = vst.msk [vmem:[%s170_s16 + $0x38] sm:$0xff] %vm1655_vm11, %v1633_v34 }
 0x235   : > { %v1637_v39 = vpop.f32.mrb[40].mxu1 }
 0x236   : > { %1663 = vst [vmem:[%s170_s16 + $0x40] sm:$0xff] %v1637_v39  ;;  %v1639_v10 = vpop.f32.mrb[41].mxu1 }
 0x237   : > { %1664 = vst.msk [vmem:[%s170_s16 + $0x48] sm:$0xff] %vm1655_vm11, %v1639_v10  ;;  %v1641_v31 = vpop.f32.mrb[42].mxu1 }
 0x238   : > { %1665 = vst [vmem:[%s170_s16 + $0x50] sm:$0xff] %v1641_v31  ;;  %v1643_v38 = vpop.f32.mrb[43].mxu1 }
 0x239   : > { %1666 = vst.msk [vmem:[%s170_s16 + $0x58] sm:$0xff] %vm1655_vm11, %v1643_v38 }
 0x23d   : > { %v1647_v42 = vpop.f32.mrb[44].mxu1 }
 0x23e   : > { %1667 = vst [vmem:[%s170_s16 + $0x60] sm:$0x3f] %v1647_v42  ;;  %v1649_v44 = vpop.f32.mrb[45].mxu1 }
 0x23f   : > { %1669 = vst.msk [vmem:[%s170_s16 + $0x68] sm:$0x3f] %vm1668_vm12, %v1649_v44  ;;  %v1651_v45 = vpop.f32.mrb[46].mxu1 }
 0x240   : > { %v1652_v46 = vpop.f32.mrb[47].mxu1 }
 0x241 PF: > { %s13_s12 = sadd.s32 1, %s2336_s12  }
 0x242   : > { %p10_p4 = scmp.ge.s32.totalorder %s13_s12, 4  }
 0x244   :  { %12 = sbr.rel (!%p10_p4) target bundleno = 1 (0x1), region = 66 }

</bundles_post_ra>
